<compile_context>
chip_gen: v5e
topology: v5e:2x2
jax: 0.10.0
libtpu: 0.0.40
codegen_flags: <defaults>
</compile_context>

<pallas_src>
import jax
import jax.numpy as jnp
from jax.experimental import pallas as pl
from jax.experimental.pallas import tpu as pltpu


def _round_up(n, m):
    return (n + m - 1) // m * m


def _layer(w_ref, b_ref, h):
    # (out, in) @ (in, TB) -> (out, TB); f32 accumulation on the MXU,
    # bias-add + LeakyReLU(0.1) in f32 on the VPU.
    y = jnp.dot(w_ref[...], h, preferred_element_type=jnp.float32) + b_ref[...]
    return jnp.where(y >= 0, y, 0.1 * y)


def _mlp_kernel(x_ref,
                w1_ref, b1_ref,
                w2_ref, b2_ref,
                w3_ref, b3_ref,
                w4_ref, b4_ref,
                o_ref):
    cdt = w1_ref.dtype                            # matmul operand dtype (f32 or bf16)
    h = x_ref[...].astype(cdt)                    # (4, TB)
    h = _layer(w1_ref, b1_ref, h).astype(cdt)     # (32, TB)
    h = _layer(w2_ref, b2_ref, h).astype(cdt)     # (64, TB)
    h = _layer(w3_ref, b3_ref, h).astype(cdt)     # (128, TB)
    h = _layer(w4_ref, b4_ref, h)                 # (2*z_dim, TB), f32
    o_ref[...] = h.astype(o_ref.dtype)


def property_encoder_forward(x, params, *, matmul_dtype=jnp.float32, tb=None):
    """x: (B, 4). params: PyTorch-layout weights (out, in) / biases (out,).
    Returns (B, 2*z_dim, 1) float32."""
    B, in_dim = x.shape
    out_dim = params["w4"].shape[0]

    # Batch tile: multiple of 128 (lane-dense), capped so per-step VMEM stays
    # a few MiB even on v7x (64 MiB physical / 32 MiB scoped).
    if tb is None:
        tb = min(2048, _round_up(max(B, 1), 128))
    tb = _round_up(tb, 128)
    b_pad = _round_up(max(B, 1), tb)

    # Feature-major input slab, zero-padded batch tail (sliced off below).
    xt = jnp.pad(x.T, ((0, 0), (0, b_pad - B)))

    ws = [params[f"w{i}"].astype(matmul_dtype) for i in range(1, 5)]
    bs = [params[f"b{i}"].astype(jnp.float32).reshape(-1, 1) for i in range(1, 5)]

    grid = (b_pad // tb,)
    x_spec = pl.BlockSpec((in_dim, tb), lambda i: (0, i))
    out_spec = pl.BlockSpec((out_dim, tb), lambda i: (0, i))
    const = lambda i: (0, 0)   # same block every step -> params stay VMEM-resident
    in_specs = [x_spec]
    args = [xt]
    for w, b in zip(ws, bs):
        in_specs += [pl.BlockSpec(w.shape, const), pl.BlockSpec(b.shape, const)]
        args += [w, b]

    flops = 2 * b_pad * (in_dim * 32 + 32 * 64 + 64 * 128 + 128 * out_dim)
    bytes_accessed = (int(xt.size) * xt.dtype.itemsize
                      + b_pad * out_dim * 4
                      + sum(int(w.size) * w.dtype.itemsize for w in ws)
                      + sum(int(b.size) * 4 for b in bs))

    out = pl.pallas_call(
        _mlp_kernel,
        out_shape=jax.ShapeDtypeStruct((out_dim, b_pad), jnp.float32),
        grid=grid,
        in_specs=in_specs,
        out_specs=out_spec,
        compiler_params=pltpu.CompilerParams(
            dimension_semantics=("parallel",),       # shard batch tiles on v7x's 2 TCs
            vmem_limit_bytes=32 * 1024 * 1024),
        cost_estimate=pl.CostEstimate(
            flops=int(flops), transcendentals=0,
            bytes_accessed=int(bytes_accessed)),
    )(*args)

    # Slice off batch padding, back to batch-major, then the module's .unsqueeze(2).
    return out[:, :B].T[:, :, None]


def init_params(key, z_dim):
    """PyTorch nn.Linear layout: w (out, in), b (out,), uniform +/- 1/sqrt(fan_in)."""
    dims = [4, 32, 64, 128, 2 * z_dim]
    params = {}
    for i, (fan_in, fan_out) in enumerate(zip(dims[:-1], dims[1:]), start=1):
        key, kw, kb = jax.random.split(key, 3)
        bound = 1.0 / (fan_in ** 0.5)
        params[f"w{i}"] = jax.random.uniform(
            kw, (fan_out, fan_in), jnp.float32, -bound, bound)
        params[f"b{i}"] = jax.random.uniform(
            kb, (fan_out,), jnp.float32, -bound, bound)
    return params


def _reference_forward(x, params):
    h = x.astype(jnp.float32)
    for i in range(1, 5):
        h = h @ params[f"w{i}"].T + params[f"b{i}"]
        h = jnp.where(h >= 0, h, 0.1 * h)
    return h[:, :, None]


if __name__ == "__main__":
    key = jax.random.PRNGKey(0)
    k_param, k_x1, k_x2 = jax.random.split(key, 3)

    z_dim = 16
    params = init_params(k_param, z_dim)

    # 1) Small batch, f32 matmul operands: strict check vs reference.
    x_small = jax.random.normal(k_x1, (8, 4), jnp.float32)
    out_small = jax.block_until_ready(
        property_encoder_forward(x_small, params, matmul_dtype=jnp.float32))
    assert out_small.shape == (8, 2 * z_dim, 1), out_small.shape
    ref_small = _reference_forward(x_small, params)
    assert jnp.allclose(out_small, ref_small, atol=1e-4, rtol=1e-4), \
        float(jnp.max(jnp.abs(out_small - ref_small)))

    # 2) Larger batch exercising the grid (tb=128 -> multiple tiles + padded tail),
    #    bf16 matmul operands (v6e/v7x MXU-native), f32 accumulate / elementwise.
    x_big = jax.random.normal(k_x2, (200, 4), jnp.float32)
    out_big = jax.block_until_ready(
        property_encoder_forward(x_big, params, matmul_dtype=jnp.bfloat16, tb=128))
    assert out_big.shape == (200, 2 * z_dim, 1), out_big.shape
    ref_big = _reference_forward(x_big, params)
    assert jnp.allclose(out_big, ref_big, atol=5e-2, rtol=5e-2), \
        float(jnp.max(jnp.abs(out_big - ref_big)))

    print("KERNEL_OK")
</pallas_src>

<mosaic_0001>
module attributes {stable_mosaic.version = 11 : i64} {
  func.func @_mlp_kernel(%arg0: i32, %arg1: memref<4x128xf32, #tpu.memory_space<vmem>>, %arg2: memref<32x4xf32, #tpu.memory_space<vmem>>, %arg3: memref<32x1xf32, #tpu.memory_space<vmem>>, %arg4: memref<64x32xf32, #tpu.memory_space<vmem>>, %arg5: memref<64x1xf32, #tpu.memory_space<vmem>>, %arg6: memref<128x64xf32, #tpu.memory_space<vmem>>, %arg7: memref<128x1xf32, #tpu.memory_space<vmem>>, %arg8: memref<32x128xf32, #tpu.memory_space<vmem>>, %arg9: memref<32x1xf32, #tpu.memory_space<vmem>>, %arg10: memref<32x128xf32, #tpu.memory_space<vmem>>) attributes {dimension_semantics = [#tpu.dimension_semantics<parallel>], iteration_bounds = array<i64: 1>, scalar_prefetch = 0 : i64, scratch_operands = 0 : i64, tpu.core_type = #tpu.core_type<tc>, window_params = [{transform_indices = @transform_0, window_bounds = array<i64: 4, 128>}, {pipeline_mode = #tpu.pipeline_mode<synchronous>, transform_indices = @transform_1, window_bounds = array<i64: 32, 4>}, {pipeline_mode = #tpu.pipeline_mode<synchronous>, transform_indices = @transform_2, window_bounds = array<i64: 32, 1>}, {pipeline_mode = #tpu.pipeline_mode<synchronous>, transform_indices = @transform_3, window_bounds = array<i64: 64, 32>}, {pipeline_mode = #tpu.pipeline_mode<synchronous>, transform_indices = @transform_4, window_bounds = array<i64: 64, 1>}, {pipeline_mode = #tpu.pipeline_mode<synchronous>, transform_indices = @transform_5, window_bounds = array<i64: 128, 64>}, {pipeline_mode = #tpu.pipeline_mode<synchronous>, transform_indices = @transform_6, window_bounds = array<i64: 128, 1>}, {pipeline_mode = #tpu.pipeline_mode<synchronous>, transform_indices = @transform_7, window_bounds = array<i64: 32, 128>}, {pipeline_mode = #tpu.pipeline_mode<synchronous>, transform_indices = @transform_8, window_bounds = array<i64: 32, 1>}, {transform_indices = @transform_9, window_bounds = array<i64: 32, 128>}]} {
    %c0 = arith.constant 0 : index
    %c0_0 = arith.constant 0 : index
    %0 = vector.load %arg1[%c0, %c0_0] : memref<4x128xf32, #tpu.memory_space<vmem>>, vector<4x128xf32>
    %c0_1 = arith.constant 0 : index
    %c0_2 = arith.constant 0 : index
    %1 = vector.load %arg2[%c0_1, %c0_2] : memref<32x4xf32, #tpu.memory_space<vmem>>, vector<32x4xf32>
    %cst = arith.constant dense<0.000000e+00> : vector<32x128xf32>
    %2 = tpu.matmul %1, %0, %cst {dimension_numbers = #tpu.dot_dimension_numbers<[1], [0], [0], [1], [0, 0, 1, 1], [], []>} : vector<32x4xf32>, vector<4x128xf32>, vector<32x128xf32> -> vector<32x128xf32>
    %c0_3 = arith.constant 0 : index
    %c0_4 = arith.constant 0 : index
    %3 = vector.load %arg3[%c0_3, %c0_4] : memref<32x1xf32, #tpu.memory_space<vmem>>, vector<32x1xf32>
    %4 = vector.broadcast %3 : vector<32x1xf32> to vector<32x128xf32>
    %5 = arith.addf %2, %4 : vector<32x128xf32>
    %cst_5 = arith.constant 0.000000e+00 : f32
    %6 = vector.broadcast %cst_5 : f32 to vector<32x128xf32>
    %7 = arith.cmpf oge, %5, %6 : vector<32x128xf32>
    %cst_6 = arith.constant 1.000000e-01 : f32
    %8 = vector.broadcast %cst_6 : f32 to vector<32x128xf32>
    %9 = arith.mulf %8, %5 : vector<32x128xf32>
    %10 = arith.select %7, %5, %9 : vector<32x128xi1>, vector<32x128xf32>
    %c0_7 = arith.constant 0 : index
    %c0_8 = arith.constant 0 : index
    %11 = vector.load %arg4[%c0_7, %c0_8] : memref<64x32xf32, #tpu.memory_space<vmem>>, vector<64x32xf32>
    %cst_9 = arith.constant dense<0.000000e+00> : vector<64x128xf32>
    %12 = tpu.matmul %11, %10, %cst_9 {dimension_numbers = #tpu.dot_dimension_numbers<[1], [0], [0], [1], [0, 0, 1, 1], [], []>} : vector<64x32xf32>, vector<32x128xf32>, vector<64x128xf32> -> vector<64x128xf32>
    %c0_10 = arith.constant 0 : index
    %c0_11 = arith.constant 0 : index
    %13 = vector.load %arg5[%c0_10, %c0_11] : memref<64x1xf32, #tpu.memory_space<vmem>>, vector<64x1xf32>
    %14 = vector.broadcast %13 : vector<64x1xf32> to vector<64x128xf32>
    %15 = arith.addf %12, %14 : vector<64x128xf32>
    %cst_12 = arith.constant 0.000000e+00 : f32
    %16 = vector.broadcast %cst_12 : f32 to vector<64x128xf32>
    %17 = arith.cmpf oge, %15, %16 : vector<64x128xf32>
    %cst_13 = arith.constant 1.000000e-01 : f32
    %18 = vector.broadcast %cst_13 : f32 to vector<64x128xf32>
    %19 = arith.mulf %18, %15 : vector<64x128xf32>
    %20 = arith.select %17, %15, %19 : vector<64x128xi1>, vector<64x128xf32>
    %c0_14 = arith.constant 0 : index
    %c0_15 = arith.constant 0 : index
    %21 = vector.load %arg6[%c0_14, %c0_15] : memref<128x64xf32, #tpu.memory_space<vmem>>, vector<128x64xf32>
    %cst_16 = arith.constant dense<0.000000e+00> : vector<128x128xf32>
    %22 = tpu.matmul %21, %20, %cst_16 {dimension_numbers = #tpu.dot_dimension_numbers<[1], [0], [0], [1], [0, 0, 1, 1], [], []>} : vector<128x64xf32>, vector<64x128xf32>, vector<128x128xf32> -> vector<128x128xf32>
    %c0_17 = arith.constant 0 : index
    %c0_18 = arith.constant 0 : index
    %23 = vector.load %arg7[%c0_17, %c0_18] : memref<128x1xf32, #tpu.memory_space<vmem>>, vector<128x1xf32>
    %24 = vector.broadcast %23 : vector<128x1xf32> to vector<128x128xf32>
    %25 = arith.addf %22, %24 : vector<128x128xf32>
    %cst_19 = arith.constant 0.000000e+00 : f32
    %26 = vector.broadcast %cst_19 : f32 to vector<128x128xf32>
    %27 = arith.cmpf oge, %25, %26 : vector<128x128xf32>
    %cst_20 = arith.constant 1.000000e-01 : f32
    %28 = vector.broadcast %cst_20 : f32 to vector<128x128xf32>
    %29 = arith.mulf %28, %25 : vector<128x128xf32>
    %30 = arith.select %27, %25, %29 : vector<128x128xi1>, vector<128x128xf32>
    %c0_21 = arith.constant 0 : index
    %c0_22 = arith.constant 0 : index
    %31 = vector.load %arg8[%c0_21, %c0_22] : memref<32x128xf32, #tpu.memory_space<vmem>>, vector<32x128xf32>
    %cst_23 = arith.constant dense<0.000000e+00> : vector<32x128xf32>
    %32 = tpu.matmul %31, %30, %cst_23 {dimension_numbers = #tpu.dot_dimension_numbers<[1], [0], [0], [1], [0, 0, 1, 1], [], []>} : vector<32x128xf32>, vector<128x128xf32>, vector<32x128xf32> -> vector<32x128xf32>
    %c0_24 = arith.constant 0 : index
    %c0_25 = arith.constant 0 : index
    %33 = vector.load %arg9[%c0_24, %c0_25] : memref<32x1xf32, #tpu.memory_space<vmem>>, vector<32x1xf32>
    %34 = vector.broadcast %33 : vector<32x1xf32> to vector<32x128xf32>
    %35 = arith.addf %32, %34 : vector<32x128xf32>
    %cst_26 = arith.constant 0.000000e+00 : f32
    %36 = vector.broadcast %cst_26 : f32 to vector<32x128xf32>
    %37 = arith.cmpf oge, %35, %36 : vector<32x128xf32>
    %cst_27 = arith.constant 1.000000e-01 : f32
    %38 = vector.broadcast %cst_27 : f32 to vector<32x128xf32>
    %39 = arith.mulf %38, %35 : vector<32x128xf32>
    %40 = arith.select %37, %35, %39 : vector<32x128xi1>, vector<32x128xf32>
    %c0_28 = arith.constant 0 : index
    %c0_29 = arith.constant 0 : index
    %41 = vector.load %arg10[%c0_28, %c0_29] : memref<32x128xf32, #tpu.memory_space<vmem>>, vector<32x128xf32>
    tpu.vector_store %arg10[%c0_28, %c0_29], %40 {strides = array<i32>} : memref<32x128xf32, #tpu.memory_space<vmem>>, vector<32x128xf32>,
    return
  }
  func.func @transform_0(%arg0: i32) -> (i32, i32) {
    %c0_i32 = arith.constant 0 : i32
    %c0_i32_0 = arith.constant 0 : i32
    return %c0_i32, %arg0 : i32, i32
  }
  func.func @transform_1(%arg0: i32) -> (i32, i32) {
    %c0_i32 = arith.constant 0 : i32
    %c0_i32_0 = arith.constant 0 : i32
    %c0_i32_1 = arith.constant 0 : i32
    return %c0_i32, %c0_i32_0 : i32, i32
  }
  func.func @transform_2(%arg0: i32) -> (i32, i32) {
    %c0_i32 = arith.constant 0 : i32
    %c0_i32_0 = arith.constant 0 : i32
    %c0_i32_1 = arith.constant 0 : i32
    return %c0_i32, %c0_i32_0 : i32, i32
  }
  func.func @transform_3(%arg0: i32) -> (i32, i32) {
    %c0_i32 = arith.constant 0 : i32
    %c0_i32_0 = arith.constant 0 : i32
    %c0_i32_1 = arith.constant 0 : i32
    return %c0_i32, %c0_i32_0 : i32, i32
  }
  func.func @transform_4(%arg0: i32) -> (i32, i32) {
    %c0_i32 = arith.constant 0 : i32
    %c0_i32_0 = arith.constant 0 : i32
    %c0_i32_1 = arith.constant 0 : i32
    return %c0_i32, %c0_i32_0 : i32, i32
  }
  func.func @transform_5(%arg0: i32) -> (i32, i32) {
    %c0_i32 = arith.constant 0 : i32
    %c0_i32_0 = arith.constant 0 : i32
    %c0_i32_1 = arith.constant 0 : i32
    return %c0_i32, %c0_i32_0 : i32, i32
  }
  func.func @transform_6(%arg0: i32) -> (i32, i32) {
    %c0_i32 = arith.constant 0 : i32
    %c0_i32_0 = arith.constant 0 : i32
    %c0_i32_1 = arith.constant 0 : i32
    return %c0_i32, %c0_i32_0 : i32, i32
  }
  func.func @transform_7(%arg0: i32) -> (i32, i32) {
    %c0_i32 = arith.constant 0 : i32
    %c0_i32_0 = arith.constant 0 : i32
    %c0_i32_1 = arith.constant 0 : i32
    return %c0_i32, %c0_i32_0 : i32, i32
  }
  func.func @transform_8(%arg0: i32) -> (i32, i32) {
    %c0_i32 = arith.constant 0 : i32
    %c0_i32_0 = arith.constant 0 : i32
    %c0_i32_1 = arith.constant 0 : i32
    return %c0_i32, %c0_i32_0 : i32, i32
  }
  func.func @transform_9(%arg0: i32) -> (i32, i32) {
    %c0_i32 = arith.constant 0 : i32
    %c0_i32_0 = arith.constant 0 : i32
    return %c0_i32, %arg0 : i32, i32
  }
}

</mosaic_0001>

<bundles_post_ra>
// kernel: tpu_custom_call.1
= control target key start
LH: loop header
LB: loop body
LE: loop exit
PB: predicated region body
PF: predicated region fallthrough
CT: control target
= control target key end

     0   :  { %vm75_vm0 = vcmask 1043456   ;;  %v701_v3 = vmov 0   ;;  %vm62_vm1 = vcmask 31744   ;;  %s993_s0 = inlined_call_operand.vmem [shape: f32[4,128], index: 0, kind: input, shape index: {}]   ;;  %s994_s1 = inlined_call_operand.vmem [shape: f32[32,4], index: 1, kind: input, shape index: {}]   ;;  %s995_s2 = inlined_call_operand.vmem [shape: f32[32,1], index: 2, kind: input, shape index: {}]   ;;  %s996_s3 = inlined_call_operand.vmem [shape: f32[64,32], index: 3, kind: input, shape index: {}]   ;;  %s997_s4 = inlined_call_operand.vmem [shape: f32[64,1], index: 4, kind: input, shape index: {}]   ;;  %s998_s5 = inlined_call_operand.vmem [shape: f32[128,64], index: 5, kind: input, shape index: {}]   ;;  %s999_s6 = inlined_call_operand.vmem [shape: f32[128,1], index: 6, kind: input, shape index: {}]   ;;  %s1000_s7 = inlined_call_operand.vmem [shape: f32[32,128], index: 7, kind: input, shape index: {}]   ;;  %s1001_s8 = inlined_call_operand.vmem [shape: f32[32,1], index: 8, kind: input, shape index: {}]   ;;  %s1002_s9 = inlined_call_operand.hbm [shape: f32[32,128], index: 9, kind: output, shape index: {}]  }
   0x1   :  { %v33_v0 = vld [vmem:[%s993_s0] sm:$0xf]  ;;  %v41_v1 = vld [vmem:[%s995_s2 + $0x18] sm:$0xff]  ;;  %v39_v2 = vld [vmem:[%s995_s2 + $0x8] sm:$0xff]  ;;  %673 = vset.pattern.permute.xlu1 %v701_v3  ;;  %672 = vset.pattern.permute.xlu0 %v701_v3 }
   0x2   :  { %v34_v4 = vld [vmem:[%s994_s1] sm:$0xff]  ;;  %631 = vmatpush.msk.msra.mxu3 %vm75_vm0, %v33_v0  ;;  %59 = vperm.xlu0 %672, %v41_v1  }
   0x3   :  { %49 = vperm.xlu1 %673, %v39_v2   ;;  %632 = vmatmul.msk.f32.vlgmr.msra.gmra.mxu3 %vm62_vm1, %v34_v4 }
   0x4   :  { %674 = vset.pattern.permute.xlu2 %v701_v3 }
   0x5   :  { %14 = vsyncpa [#allocation3], 0  ;;  %v40_v5 = vld [vmem:[%s995_s2 + $0x10] sm:$0xff]  ;;  %v38_v6 = vld [vmem:[%s995_s2] sm:$0xff]  ;;  %vm176_vm6 = vcmask 261120   ;;  %vm378_vm15 = vcmask 523264  }
   0x6   :  { %v35_v7 = vld [vmem:[%s994_s1 + $0x8] sm:$0xff]  ;;  %v132_v9 = vld [vmem:[%s997_s4 + $0x20] sm:$0xff]  ;;  %v36_v10 = vld [vmem:[%s994_s1 + $0x10] sm:$0xff]  ;;  %s619_s13 = sshll.u32 %s1002_s9, 4  ;;  %s703_s14 = smov 128   ;;  %s620_s13 = int_to_ptr.hbm [resolvable:$true] %s619_s13 }
   0x7   :  { %v133_v8 = vld [vmem:[%s997_s4 + $0x28] sm:$0xff]  ;;  %v130_v11 = vld [vmem:[%s997_s4 + $0x10] sm:$0xff]  ;;  %v37_v13 = vld [vmem:[%s994_s1 + $0x18] sm:$0xff]  ;;  %s704_s15 = smov 8  }
   0x8   :  { %v129_v12 = vld [vmem:[%s997_s4 + $0x8] sm:$0xff]  ;;  %v297_v14 = vld [vmem:[%s999_s6 + $0x78] sm:$0xff]  ;;  %v296_v15 = vld [vmem:[%s999_s6 + $0x70] sm:$0xff] }
   0x9   :  { %v294_v16 = vld [vmem:[%s999_s6 + $0x60] sm:$0xff]  ;;  %v293_v17 = vld [vmem:[%s999_s6 + $0x58] sm:$0xff]  ;;  %v291_v18 = vld [vmem:[%s999_s6 + $0x48] sm:$0xff] }
   0xa   :  { %54 = vperm.xlu0 %672, %v40_v5   ;;  %v290_v19 = vld [vmem:[%s999_s6 + $0x40] sm:$0xff]  ;;  %v288_v20 = vld [vmem:[%s999_s6 + $0x30] sm:$0xff]  ;;  %v287_v21 = vld [vmem:[%s999_s6 + $0x28] sm:$0xff] }
   0xb   :  { %44 = vperm.xlu1 %673, %v38_v6   ;;  %633 = vmatmul.msk.f32.gmra.mxu3 %vm62_vm1, %v35_v7  ;;  %v285_v22 = vld [vmem:[%s999_s6 + $0x18] sm:$0xff]  ;;  %v284_v23 = vld [vmem:[%s999_s6 + $0x10] sm:$0xff]  ;;  %v282_v24 = vld [vmem:[%s999_s6] sm:$0xff] }
   0xc   :  { %v544_v25 = vld [vmem:[%s1001_s8] sm:$0xff]  ;;  %v546_v26 = vld [vmem:[%s1001_s8 + $0x10] sm:$0xff]  ;;  %v547_v27 = vld [vmem:[%s1001_s8 + $0x18] sm:$0xff] }
   0xd   :  { %v135_v31 = vld [vmem:[%s997_s4 + $0x38] sm:$0xff]  ;;  %v134_v34 = vld [vmem:[%s997_s4 + $0x30] sm:$0xff]  ;;  %v120_v50 = vld [vmem:[%s996_s3] sm:$0xff] }
   0xe   :  { %173 = vperm.xlu2 %674, %v135_v31   ;;  %v131_v46 = vld [vmem:[%s997_s4 + $0x18] sm:$0xff]  ;;  %v128_v52 = vld [vmem:[%s997_s4] sm:$0xff]  ;;  %v121_v53 = vld [vmem:[%s996_s3 + $0x8] sm:$0xff] }
   0xf   :  { %v295_v54 = vld [vmem:[%s999_s6 + $0x68] sm:$0xff]  ;;  %v122_v55 = vld [vmem:[%s996_s3 + $0x10] sm:$0xff]  ;;  %v123_v57 = vld [vmem:[%s996_s3 + $0x18] sm:$0xff] }
  0x10   :  { %v292_v56 = vld [vmem:[%s999_s6 + $0x50] sm:$0xff]  ;;  %v289_v58 = vld [vmem:[%s999_s6 + $0x38] sm:$0xff]  ;;  %v124_v59 = vld [vmem:[%s996_s3 + $0x20] sm:$0xff] }
  0x11   :  { %v286_v60 = vld [vmem:[%s999_s6 + $0x20] sm:$0xff]  ;;  %v125_v61 = vld [vmem:[%s996_s3 + $0x28] sm:$0xff]  ;;  %v126_v63 = vld [vmem:[%s996_s3 + $0x30] sm:$0xff] }
  0x12   :  { %163 = vperm.xlu0 %672, %v133_v8   ;;  %v283_v62 = vld [vmem:[%s999_s6 + $0x8] sm:$0xff]  ;;  %v127_v1 = vld [vmem:[%s996_s3 + $0x38] sm:$0xff] }
  0x13   :  { %158 = vperm.xlu1 %673, %v132_v9   ;;  %634 = vmatmul.msk.f32.gmra.mxu3 %vm62_vm1, %v36_v10  ;;  %v545_v0 = vld [vmem:[%s1001_s8 + $0x8] sm:$0xff] }
  0x16   :  { %168 = vperm.xlu2 %674, %v134_v34  }
  0x1a   :  { %148 = vperm.xlu0 %672, %v130_v11  }
  0x1b   :  { %143 = vperm.xlu1 %673, %v129_v12   ;;  %635 = vmatmul.msk.f32.gmra.mxu3 %vm62_vm1, %v37_v13 }
  0x1e   :  { %153 = vperm.xlu2 %674, %v131_v46   ;;  %v268_v46 = vld [vmem:[%s998_s5 + $0x10] sm:$0xff] }
  0x22   :  { %375 = vperm.xlu0 %672, %v297_v14  }
  0x23   :  { %370 = vperm.xlu1 %673, %v296_v15  }
  0x26   :  { %138 = vperm.xlu2 %674, %v128_v52   ;;  %v271_v52 = vld [vmem:[%s998_s5 + $0x28] sm:$0xff] }
  0x2a   :  { %360 = vperm.xlu0 %672, %v294_v16  }
  0x2b   :  { %355 = vperm.xlu1 %673, %v293_v17  }
  0x2e   :  { %365 = vperm.xlu2 %674, %v295_v54   ;;  %v272_v54 = vld [vmem:[%s998_s5 + $0x30] sm:$0xff] }
  0x32   :  { %345 = vperm.xlu0 %672, %v291_v18  }
  0x33   :  { %340 = vperm.xlu1 %673, %v290_v19  }
  0x36   :  { %350 = vperm.xlu2 %674, %v292_v56   ;;  %v273_v56 = vld [vmem:[%s998_s5 + $0x38] sm:$0xff] }
  0x3a   :  { %330 = vperm.xlu0 %672, %v288_v20  }
  0x3b   :  { %325 = vperm.xlu1 %673, %v287_v21  }
  0x3e   :  { %335 = vperm.xlu2 %674, %v289_v58  }
  0x42   :  { %315 = vperm.xlu0 %672, %v285_v22  }
  0x43   :  { %310 = vperm.xlu1 %673, %v284_v23  }
  0x46   :  { %320 = vperm.xlu2 %674, %v286_v60  }
  0x4a   :  { %300 = vperm.xlu0 %672, %v282_v24  }
  0x4b   :  { %550 = vperm.xlu1 %673, %v544_v25  }
  0x4e   :  { %305 = vperm.xlu2 %674, %v283_v62  }
  0x52   :  { %560 = vperm.xlu0 %672, %v546_v26  }
  0x53   :  { %565 = vperm.xlu1 %673, %v547_v27  }
  0x56   :  { %555 = vperm.xlu2 %674, %v545_v0  }
  0x68   :  { %v174_v7 = vpop.permute.xlu2 %173 }
  0x70   :  { %v169_v9 = vpop.permute.xlu2 %168 }
  0x74   :  { %v60_v30 = vpop.permute.xlu0 %59 }
  0x75   :  { %v50_v32 = vpop.permute.xlu1 %49 }
  0x78   :  { %v154_v14 = vpop.permute.xlu2 %153 }
  0x7c   :  { %v55_v35 = vpop.permute.xlu0 %54 }
  0x7d   :  { %v45_v40 = vpop.permute.xlu1 %44 }
  0x84   :  { %v164_v11 = vpop.permute.xlu0 %163 }
  0x85   :  { %v159_v12 = vpop.permute.xlu1 %158 }
  0x86   :  { %v96_v28 = vpop.f32.mrf.mxu3 }
  0x87   :  { %v97_v41 = vadd.f32 %v96_v28, %v45_v40 }
  0x89   :  { %v112_v48 = vmul.f32 0.1, %v97_v41  ;;  %vm108_vm5 = vcmp.ge.f32.partialorder %v97_v41, 0.0 }
  0x8b   :  { %v116_v51 = vsel %vm108_vm5, %v97_v41, %v112_v48  ;;  %v266_v41 = vld [vmem:[%s998_s5] sm:$0xff]  ;;  %v269_v48 = vld [vmem:[%s998_s5 + $0x18] sm:$0xff] }
  0x8c   :  { %v149_v24 = vpop.permute.xlu0 %148 }
  0x8d   :  { %v144_v28 = vpop.permute.xlu1 %143 }
  0x8e   :  { %v99_v29 = vpop.f32.mrf.mxu3 }
  0x8f   :  { %v100_v38 = vadd.f32 %v99_v29, %v50_v32  ;;  %v139_v32 = vpop.permute.xlu2 %138 }
  0x91   :  { %v113_v45 = vmul.f32 0.1, %v100_v38  ;;  %vm109_vm4 = vcmp.ge.f32.partialorder %v100_v38, 0.0 }
  0x93   :  { %v117_v49 = vsel %vm109_vm4, %v100_v38, %v113_v45  ;;  %v275_v45 = vld [vmem:[%s998_s5 + $0x48] sm:$0xff] }
  0x96   :  { %v102_v33 = vpop.f32.mrf.mxu3 }
  0x97   :  { %v103_v36 = vadd.f32 %v102_v33, %v55_v35 }
  0x99   :  { %v114_v43 = vmul.f32 0.1, %v103_v36  ;;  %vm110_vm3 = vcmp.ge.f32.partialorder %v103_v36, 0.0 }
  0x9b   :  { %v118_v47 = vsel %vm110_vm3, %v103_v36, %v114_v43 }
  0x9e   :  { %v105_v37 = vpop.f32.mrf.mxu3 }
  0x9f   :  { %v106_v39 = vadd.f32 %v105_v37, %v60_v30 }
  0xa1   :  { %vm111_vm2 = vcmp.ge.f32.partialorder %v106_v39, 0.0  ;;  %v115_v42 = vmul.f32 0.1, %v106_v39 }
  0xa3   :  { %v119_v44 = vsel %vm111_vm2, %v106_v39, %v115_v42  ;;  %v274_v42 = vld [vmem:[%s998_s5 + $0x40] sm:$0xff] }
  0xa4   :  { %213 = vmatpush.msra.mxu1 %v119_v44  ;;  %v267_v44 = vld [vmem:[%s998_s5 + $0x8] sm:$0xff] }
  0xa6   :  { %214 = vmatpush.msra.mxu1 %v118_v47  ;;  %v276_v47 = vld [vmem:[%s998_s5 + $0x50] sm:$0xff] }
  0xa8   :  { %215 = vmatpush.msra.mxu1 %v117_v49  ;;  %v277_v49 = vld [vmem:[%s998_s5 + $0x58] sm:$0xff] }
  0xaa   :  { %216 = vmatpush.msra.mxu1 %v116_v51  ;;  %v278_v51 = vld [vmem:[%s998_s5 + $0x60] sm:$0xff] }
  0xab   :  { %636 = vmatmul.msk.f32.vlgmr.msra.gmra.mxu1 %vm176_vm6, %v120_v50  ;;  %v270_v50 = vld [vmem:[%s998_s5 + $0x20] sm:$0xff] }
  0xb3   :  { %637 = vmatmul.msk.f32.gmra.mxu1 %vm176_vm6, %v121_v53  ;;  %v279_v53 = vld [vmem:[%s998_s5 + $0x68] sm:$0xff] }
  0xbb   :  { %638 = vmatmul.msk.f32.gmra.mxu1 %vm176_vm6, %v122_v55  ;;  %v280_v55 = vld [vmem:[%s998_s5 + $0x70] sm:$0xff] }
  0xc3   :  { %639 = vmatmul.msk.f32.gmra.mxu1 %vm176_vm6, %v123_v57  ;;  %v281_v57 = vld [vmem:[%s998_s5 + $0x78] sm:$0xff] }
  0xcb   :  { %640 = vmatmul.msk.f32.gmra.mxu1 %vm176_vm6, %v124_v59 }
  0xd3   :  { %641 = vmatmul.msk.f32.gmra.mxu1 %vm176_vm6, %v125_v61 }
  0xdb   :  { %642 = vmatmul.msk.f32.gmra.mxu1 %vm176_vm6, %v126_v63 }
  0xe3   :  { %643 = vmatmul.msk.f32.gmra.mxu1 %vm176_vm6, %v127_v1 }
 0x128   :  { %v218_v2 = vpop.f32.mrf.mxu1 }
 0x129   :  { %v219_v33 = vadd.f32 %v218_v2, %v139_v32  ;;  %v376_v2 = vpop.permute.xlu0 %375 }
 0x12b   :  { %v250_v39 = vmul.f32 0.1, %v219_v33  ;;  %vm242_vm14 = vcmp.ge.f32.partialorder %v219_v33, 0.0 }
 0x12d   :  { %v258_v43 = vsel %vm242_vm14, %v219_v33, %v250_v39 }
 0x130   :  { %v221_v3 = vpop.f32.mrf.mxu1 }
 0x131   :  { %v222_v29 = vadd.f32 %v221_v3, %v144_v28 }
 0x133   :  { %v251_v37 = vmul.f32 0.1, %v222_v29  ;;  %vm243_vm13 = vcmp.ge.f32.partialorder %v222_v29, 0.0 }
 0x135   :  { %v259_v40 = vsel %vm243_vm13, %v222_v29, %v251_v37 }
 0x138   :  { %v224_v4 = vpop.f32.mrf.mxu1 }
 0x139   :  { %v225_v25 = vadd.f32 %v224_v4, %v149_v24 }
 0x13b   :  { %v252_v35 = vmul.f32 0.1, %v225_v25  ;;  %vm244_vm12 = vcmp.ge.f32.partialorder %v225_v25, 0.0 }
 0x13d   :  { %v260_v38 = vsel %vm244_vm12, %v225_v25, %v252_v35 }
 0x140   :  { %v227_v5 = vpop.f32.mrf.mxu1 }
 0x141   :  { %v228_v21 = vadd.f32 %v227_v5, %v154_v14  ;;  %v371_v5 = vpop.permute.xlu1 %370 }
 0x143   :  { %v253_v31 = vmul.f32 0.1, %v228_v21  ;;  %vm245_vm11 = vcmp.ge.f32.partialorder %v228_v21, 0.0 }
 0x145   :  { %v261_v36 = vsel %vm245_vm11, %v228_v21, %v253_v31 }
 0x148   :  { %v230_v6 = vpop.f32.mrf.mxu1 }
 0x149   :  { %v231_v18 = vadd.f32 %v230_v6, %v159_v12  ;;  %v366_v6 = vpop.permute.xlu2 %365 }
 0x14b   :  { %v254_v27 = vmul.f32 0.1, %v231_v18  ;;  %vm246_vm10 = vcmp.ge.f32.partialorder %v231_v18, 0.0 }
 0x14d   :  { %v262_v34 = vsel %vm246_vm10, %v231_v18, %v254_v27 }
 0x150   :  { %v233_v8 = vpop.f32.mrf.mxu1 }
 0x151   :  { %v234_v16 = vadd.f32 %v233_v8, %v164_v11  ;;  %v361_v8 = vpop.permute.xlu0 %360  ;;  %v351_v12 = vpop.permute.xlu2 %350 }
 0x153   :  { %v255_v23 = vmul.f32 0.1, %v234_v16  ;;  %vm247_vm9 = vcmp.ge.f32.partialorder %v234_v16, 0.0 }
 0x155   :  { %v263_v30 = vsel %vm247_vm9, %v234_v16, %v255_v23 }
 0x158   :  { %v236_v10 = vpop.f32.mrf.mxu1 }
 0x159   :  { %v237_v13 = vadd.f32 %v236_v10, %v169_v9  ;;  %v356_v10 = vpop.permute.xlu1 %355  ;;  %v336_v23 = vpop.permute.xlu2 %335 }
 0x15b   :  { %v256_v20 = vmul.f32 0.1, %v237_v13  ;;  %vm248_vm8 = vcmp.ge.f32.partialorder %v237_v13, 0.0 }
 0x15d   :  { %v264_v26 = vsel %vm248_vm8, %v237_v13, %v256_v20  ;;  %v346_v13 = vpop.permute.xlu0 %345 }
 0x160   :  { %v239_v15 = vpop.f32.mrf.mxu1 }
 0x161   :  { %v240_v17 = vadd.f32 %v239_v15, %v174_v7 }
 0x163   :  { %vm249_vm7 = vcmp.ge.f32.partialorder %v240_v17, 0.0  ;;  %v257_v19 = vmul.f32 0.1, %v240_v17 }
 0x165   :  { %v265_v22 = vsel %vm249_vm7, %v240_v17, %v257_v19  ;;  %v341_v19 = vpop.permute.xlu1 %340  ;;  %v331_v27 = vpop.permute.xlu0 %330 }
 0x166   :  { %435 = vmatpush.msra.mxu0 %v265_v22  ;;  %660 = vmatpush.msra.mxu2 %v265_v22 }
 0x168   :  { %436 = vmatpush.msra.mxu0 %v264_v26  ;;  %661 = vmatpush.msra.mxu2 %v264_v26 }
 0x16a   :  { %437 = vmatpush.msra.mxu0 %v263_v30  ;;  %662 = vmatpush.msra.mxu2 %v263_v30 }
 0x16c   :  { %438 = vmatpush.msra.mxu0 %v262_v34  ;;  %663 = vmatpush.msra.mxu2 %v262_v34 }
 0x16e   :  { %439 = vmatpush.msra.mxu0 %v261_v36  ;;  %664 = vmatpush.msra.mxu2 %v261_v36 }
 0x170   :  { %440 = vmatpush.msra.mxu0 %v260_v38  ;;  %665 = vmatpush.msra.mxu2 %v260_v38  ;;  %v326_v38 = vpop.permute.xlu1 %325 }
 0x172   :  { %441 = vmatpush.msra.mxu0 %v259_v40  ;;  %666 = vmatpush.msra.mxu2 %v259_v40 }
 0x174   :  { %442 = vmatpush.msra.mxu0 %v258_v43  ;;  %667 = vmatpush.msra.mxu2 %v258_v43 }
 0x175   :  { %644 = vmatmul.msk.f32.vlgmr.msra.gmra.mxu0 %vm378_vm15, %v266_v41  ;;  %652 = vmatmul.msk.f32.vlgmr.msra.gmra.mxu2 %vm378_vm15, %v274_v42  ;;  %v321_v42 = vpop.permute.xlu2 %320 }
 0x17d   :  { %645 = vmatmul.msk.f32.gmra.mxu0 %vm378_vm15, %v267_v44  ;;  %653 = vmatmul.msk.f32.gmra.mxu2 %vm378_vm15, %v275_v45 }
 0x185   :  { %646 = vmatmul.msk.f32.gmra.mxu0 %vm378_vm15, %v268_v46  ;;  %654 = vmatmul.msk.f32.gmra.mxu2 %vm378_vm15, %v276_v47  ;;  %v316_v46 = vpop.permute.xlu0 %315 }
 0x18d   :  { %647 = vmatmul.msk.f32.gmra.mxu0 %vm378_vm15, %v269_v48  ;;  %655 = vmatmul.msk.f32.gmra.mxu2 %vm378_vm15, %v277_v49 }
 0x195   :  { %648 = vmatmul.msk.f32.gmra.mxu0 %vm378_vm15, %v270_v50  ;;  %656 = vmatmul.msk.f32.gmra.mxu2 %vm378_vm15, %v278_v51 }
 0x19d   :  { %649 = vmatmul.msk.f32.gmra.mxu0 %vm378_vm15, %v271_v52  ;;  %657 = vmatmul.msk.f32.gmra.mxu2 %vm378_vm15, %v279_v53 }
 0x1a5   :  { %650 = vmatmul.msk.f32.gmra.mxu0 %vm378_vm15, %v272_v54  ;;  %658 = vmatmul.msk.f32.gmra.mxu2 %vm378_vm15, %v280_v55 }
 0x1ad   :  { %651 = vmatmul.msk.f32.gmra.mxu0 %vm378_vm15, %v273_v56  ;;  %659 = vmatmul.msk.f32.gmra.mxu2 %vm378_vm15, %v281_v57  ;;  %v311_v56 = vpop.permute.xlu1 %310 }
 0x1f2   :  { %v966_v58 = vpop.f32.mrf.mxu0 }
 0x1f8   :  { %v468_v59 = vpop.f32.mrf.mxu2 }
 0x1f9   :  { %v469_v35 = vadd.f32 %v468_v59, %v341_v19 }
 0x1fa   :  { %v968_v60 = vpop.f32.mrf.mxu0 }
 0x1fb   :  { %v516_v45 = vmul.f32 0.1, %v469_v35  ;;  %vm500_vm7 = vcmp.ge.f32.partialorder %v469_v35, 0.0 }
 0x1fd   :  { %v532_v51 = vsel %vm500_vm7, %v469_v35, %v516_v45 }
 0x200   :  { %v471_v61 = vpop.f32.mrf.mxu2 }
 0x201   :  { %v472_v31 = vadd.f32 %v471_v61, %v346_v13  ;;  %v543_v13 = vld [vmem:[%s1000_s7 + $0x18] sm:$0xff] }
 0x202   :  { %v970_v62 = vpop.f32.mrf.mxu0 }
 0x203   :  { %v517_v41 = vmul.f32 0.1, %v472_v31  ;;  %vm501_vm6 = vcmp.ge.f32.partialorder %v472_v31, 0.0  ;;  %v451_v57 = vadd.f32 %v970_v62, %v311_v56 }
 0x205   :  { %v533_v48 = vsel %vm501_vm6, %v472_v31, %v517_v41  ;;  %vm494_vm13 = vcmp.ge.f32.partialorder %v451_v57, 0.0 }
 0x208   :  { %v474_v63 = vpop.f32.mrf.mxu2 }
 0x209   :  { %v475_v28 = vadd.f32 %v474_v63, %v351_v12  ;;  %v306_v63 = vpop.permute.xlu2 %305  ;;  %v542_v12 = vld [vmem:[%s1000_s7 + $0x10] sm:$0xff] }
 0x20a   :  { %v972_v1 = vpop.f32.mrf.mxu0 }
 0x20b   :  { %v518_v37 = vmul.f32 0.1, %v475_v28  ;;  %vm502_vm5 = vcmp.ge.f32.partialorder %v475_v28, 0.0  ;;  %v454_v53 = vadd.f32 %v972_v1, %v316_v46 }
 0x20d   :  { %v534_v44 = vsel %vm502_vm5, %v475_v28, %v518_v37  ;;  %vm495_vm12 = vcmp.ge.f32.partialorder %v454_v53, 0.0 }
 0x210   :  { %v477_v0 = vpop.f32.mrf.mxu2 }
 0x211   :  { %v478_v24 = vadd.f32 %v477_v0, %v356_v10  ;;  %v448_v0 = vadd.f32 %v968_v60, %v306_v63  ;;  %v540_v10 = vld [vmem:[%s1000_s7] sm:$0xff]  ;;  %v556_v19 = vpop.permute.xlu2 %555 }
 0x212   :  { %v456_v4 = vpop.f32.mrf.mxu0 }
 0x213   :  { %v519_v33 = vmul.f32 0.1, %v478_v24  ;;  %vm503_vm4 = vcmp.ge.f32.partialorder %v478_v24, 0.0  ;;  %v457_v50 = vadd.f32 %v456_v4, %v321_v42  ;;  %v301_v4 = vpop.permute.xlu0 %300  ;;  %v509_v62 = vmul.f32 0.1, %v448_v0 }
 0x214   :  { %v445_v1 = vadd.f32 %v966_v58, %v301_v4  ;;  %vm493_vm14 = vcmp.ge.f32.partialorder %v448_v0, 0.0  ;;  %v541_v58 = vld [vmem:[%s1000_s7 + $0x8] sm:$0xff]  ;;  %s702_s7 = smov [#allocation2]  }
 0x215   :  { %v535_v40 = vsel %vm503_vm4, %v478_v24, %v519_v33  ;;  %v512_v61 = vmul.f32 0.1, %v457_v50  ;;  %vm496_vm11 = vcmp.ge.f32.partialorder %v457_v50, 0.0  ;;  %v525_v60 = vsel %vm493_vm14, %v448_v0, %v509_v62  ;;  %s617_s10 = sshll.u32 %s702_s7, 4  ;;  %s618_s10 = int_to_ptr.vmem [resolvable:$true] %s617_s10 }
 0x216   :  { %vm492_vm15 = vcmp.ge.f32.partialorder %v445_v1, 0.0 }
 0x218   :  { %v480_v3 = vpop.f32.mrf.mxu2 }
 0x219   :  { %v481_v20 = vadd.f32 %v480_v3, %v361_v8  ;;  %v511_v3 = vmul.f32 0.1, %v454_v53 }
 0x21a   :  { %v459_v9 = vpop.f32.mrf.mxu0 }
 0x21b   :  { %v520_v30 = vmul.f32 0.1, %v481_v20  ;;  %vm504_vm3 = vcmp.ge.f32.partialorder %v481_v20, 0.0  ;;  %v460_v47 = vadd.f32 %v459_v9, %v326_v38  ;;  %v508_v9 = vmul.f32 0.1, %v445_v1  ;;  %v561_v24 = vpop.permute.xlu0 %560 }
 0x21d   :  { %v536_v36 = vsel %vm504_vm3, %v481_v20, %v520_v30  ;;  %v513_v55 = vmul.f32 0.1, %v460_v47  ;;  %vm497_vm10 = vcmp.ge.f32.partialorder %v460_v47, 0.0 }
 0x220   :  { %v483_v7 = vpop.f32.mrf.mxu2 }
 0x221   :  { %v484_v17 = vadd.f32 %v483_v7, %v366_v6  ;;  %v510_v6 = vmul.f32 0.1, %v451_v57  ;;  %v527_v7 = vsel %vm495_vm12, %v454_v53, %v511_v3 }
 0x222   :  { %v462_v15 = vpop.f32.mrf.mxu0 }
 0x223   :  { %v521_v26 = vmul.f32 0.1, %v484_v17  ;;  %vm505_vm2 = vcmp.ge.f32.partialorder %v484_v17, 0.0  ;;  %v463_v43 = vadd.f32 %v462_v15, %v331_v27  ;;  %v526_v8 = vsel %vm494_vm13, %v451_v57, %v510_v6 }
 0x225   :  { %v537_v32 = vsel %vm505_vm2, %v484_v17, %v521_v26  ;;  %v514_v52 = vmul.f32 0.1, %v463_v43  ;;  %vm498_vm9 = vcmp.ge.f32.partialorder %v463_v43, 0.0 }
 0x227   :  { %v530_v59 = vsel %vm498_vm9, %v463_v43, %v514_v52 }
 0x228   :  { %v486_v11 = vpop.f32.mrf.mxu2 }
 0x229   :  { %v487_v14 = vadd.f32 %v486_v11, %v371_v5  ;;  %v528_v5 = vsel %vm496_vm11, %v457_v50, %v512_v61  ;;  %v524_v11 = vsel %vm492_vm15, %v445_v1, %v508_v9 }
 0x22a   :  { %v465_v34 = vpop.f32.mrf.mxu0 }
 0x22b   :  { %v522_v22 = vmul.f32 0.1, %v487_v14  ;;  %vm506_vm1 = vcmp.ge.f32.partialorder %v487_v14, 0.0  ;;  %v466_v39 = vadd.f32 %v465_v34, %v336_v23 }
 0x22d   :  { %v538_v29 = vsel %vm506_vm1, %v487_v14, %v522_v22  ;;  %v515_v49 = vmul.f32 0.1, %v466_v39  ;;  %vm499_vm8 = vcmp.ge.f32.partialorder %v466_v39, 0.0  ;;  %v551_v14 = vpop.permute.xlu1 %550 }
 0x22f   :  { %v531_v54 = vsel %vm499_vm8, %v466_v39, %v515_v49 }
 0x230   :  { %v489_v16 = vpop.f32.mrf.mxu2 }
 0x231   :  { %v490_v18 = vadd.f32 %v489_v16, %v376_v2  ;;  %v529_v2 = vsel %vm497_vm10, %v460_v47, %v513_v55 }
 0x233   :  { %vm507_vm0 = vcmp.ge.f32.partialorder %v490_v18, 0.0  ;;  %v523_v21 = vmul.f32 0.1, %v490_v18 }
 0x235   :  { %v539_v25 = vsel %vm507_vm0, %v490_v18, %v523_v21 }
 0x236   :  { %568 = vmatpush.msrb.mxu3 %v539_v25 }
 0x238   :  { %569 = vmatpush.msrb.mxu3 %v538_v29  ;;  %v566_v29 = vpop.permute.xlu1 %565 }
 0x23a   :  { %570 = vmatpush.msrb.mxu3 %v537_v32 }
 0x23c   :  { %571 = vmatpush.msrb.mxu3 %v536_v36 }
 0x23e   :  { %572 = vmatpush.msrb.mxu3 %v535_v40 }
 0x240   :  { %573 = vmatpush.msrb.mxu3 %v534_v44 }
 0x242   :  { %574 = vmatpush.msrb.mxu3 %v533_v48 }
 0x244   :  { %575 = vmatpush.msrb.mxu3 %v532_v51 }
 0x246   :  { %576 = vmatpush.msrb.mxu3 %v531_v54 }
 0x248   :  { %577 = vmatpush.msrb.mxu3 %v530_v59 }
 0x24a   :  { %578 = vmatpush.msrb.mxu3 %v529_v2 }
 0x24c   :  { %579 = vmatpush.msrb.mxu3 %v528_v5 }
 0x24e   :  { %580 = vmatpush.msrb.mxu3 %v527_v7 }
 0x250   :  { %581 = vmatpush.msrb.mxu3 %v526_v8 }
 0x252   :  { %582 = vmatpush.msrb.mxu3 %v525_v60 }
 0x254   :  { %583 = vmatpush.msrb.mxu3 %v524_v11 }
 0x255   :  { %584 = vmatmul.f32.vlgmr.msrb.gmra.mxu3 %v540_v10 }
 0x25d   :  { %587 = vmatmul.f32.gmra.mxu3 %v541_v58 }
 0x265   :  { %590 = vmatmul.f32.gmra.mxu3 %v542_v12 }
 0x26d   :  { %593 = vmatmul.f32.gmra.mxu3 %v543_v13 }
 0x2d8   :  { %v585_v15 = vpop.f32.mrf.mxu3 }
 0x2d9   :  { %v586_v16 = vadd.f32 %v585_v15, %v551_v14 }
 0x2db   :  { %vm597_vm0 = vcmp.ge.f32.partialorder %v586_v16, 0.0  ;;  %v601_v17 = vmul.f32 0.1, %v586_v16 }
 0x2dd   :  { %v605_v18 = vsel %vm597_vm0, %v586_v16, %v601_v17 }
 0x2de   :  { %609 = vst [vmem:[#allocation2] sm:$0xff] %v605_v18 }
 0x2e0   :  { %v588_v20 = vpop.f32.mrf.mxu3 }
 0x2e1   :  { %v589_v21 = vadd.f32 %v588_v20, %v556_v19 }
 0x2e3   :  { %vm598_vm1 = vcmp.ge.f32.partialorder %v589_v21, 0.0  ;;  %v602_v22 = vmul.f32 0.1, %v589_v21 }
 0x2e5   :  { %v606_v23 = vsel %vm598_vm1, %v589_v21, %v602_v22 }
 0x2e6   :  { %610 = vst [vmem:[#allocation2 + $0x8] sm:$0xff] %v606_v23 }
 0x2e8   :  { %v591_v25 = vpop.f32.mrf.mxu3 }
 0x2e9   :  { %v592_v26 = vadd.f32 %v591_v25, %v561_v24 }
 0x2eb   :  { %vm599_vm2 = vcmp.ge.f32.partialorder %v592_v26, 0.0  ;;  %v603_v27 = vmul.f32 0.1, %v592_v26 }
 0x2ed   :  { %v607_v28 = vsel %vm599_vm2, %v592_v26, %v603_v27 }
 0x2ee   :  { %611 = vst [vmem:[#allocation2 + $0x10] sm:$0xff] %v607_v28 }
 0x2f0   :  { %v594_v30 = vpop.f32.mrf.mxu3 }
 0x2f1   :  { %v595_v31 = vadd.f32 %v594_v30, %v566_v29 }
 0x2f3   :  { %vm600_vm3 = vcmp.ge.f32.partialorder %v595_v31, 0.0  ;;  %v604_v32 = vmul.f32 0.1, %v595_v31 }
 0x2f5   :  { %v608_v33 = vsel %vm600_vm3, %v595_v31, %v604_v32 }
 0x2f6   :  { %612 = vst [vmem:[#allocation2 + $0x18] sm:$0xff] %v608_v33 }
 0x2f7   :  { %625 = dma.vmem_to_hbm [thread:$0]  %s618_s10, 512, %s620_s13, [#allocation3], %s703_s14, %s703_s14, %s704_s15  }
 0x2f8   :  { %699 = dma.done.wait [#allocation3], 512  }
 0x2f9   :  { %700 = vsyncadd [#allocation3], 4294966784 }
 0x2fa   :  { %630 = vsyncpa [#allocation3], 1 }

</bundles_post_ra>
